<compile_context>
chip_gen: v7x
topology: tpu7x:2x2x1
jax: 0.10.0
libtpu: 0.0.40
codegen_flags: <defaults>
</compile_context>

<pallas_src>
import functools

import jax
import jax.numpy as jnp
from jax.experimental import pallas as pl
from jax.experimental.pallas import tpu as pltpu


# --------------------------------------------------------------------------------------
# Kernels
# --------------------------------------------------------------------------------------

def _nll_partial_dense_kernel(scores_ref, targets_ref, partial_ref, *,
                              n_total, tile_n, num_classes):
    """Per-block partial sum of scores[r, argmax(targets[r])] (dense one-hot/soft targets)."""
    i = pl.program_id(0)

    s = scores_ref[...]                       # (TN, C), native dtype
    t = targets_ref[...]                      # (TN, C), native dtype
    if t.dtype != jnp.float32:
        # bf16 compares lack VALU support on v5e; upcast only when needed.
        t = t.astype(jnp.float32)

    # Per-row argmax of targets: first occurrence of the max (torch .max(dim=1) tie-break).
    row_max = jnp.max(t, axis=1, keepdims=True)                          # (TN, 1)
    col_ids = jax.lax.broadcasted_iota(jnp.int32, (1, num_classes), 1)   # (1, C) -> broadcast
    idx = jnp.min(jnp.where(t == row_max, col_ids, num_classes),
                  axis=1, keepdims=True)                                 # (TN, 1)

    # Fused one-hot select + remainder-row mask, single dense 2D reduce.
    row_ids = jax.lax.broadcasted_iota(jnp.int32, (tile_n, 1), 0) + i * tile_n
    sel = (col_ids == idx) & (row_ids < n_total)                         # (TN, C)
    block_sum = jnp.sum(jnp.where(sel, s.astype(jnp.float32), 0.0))

    # One lane-aligned partial-sum tile per grid step (reduced in the wrapper).
    partial_ref[...] = jnp.full((1, 8, 128), block_sum, dtype=jnp.float32)


def _nll_partial_label_kernel(scores_ref, labels_ref, partial_ref, *,
                              n_total, tile_n, num_classes):
    """Per-block partial sum of scores[r, labels[r]] (integer-label fast path)."""
    i = pl.program_id(0)

    s = scores_ref[...]                       # (TN, C), native dtype
    lab = labels_ref[...]                     # (TN, 1), int32

    col_ids = jax.lax.broadcasted_iota(jnp.int32, (1, num_classes), 1)   # (1, C)
    row_ids = jax.lax.broadcasted_iota(jnp.int32, (tile_n, 1), 0) + i * tile_n
    sel = (col_ids == lab) & (row_ids < n_total)                         # (TN, C)
    block_sum = jnp.sum(jnp.where(sel, s.astype(jnp.float32), 0.0))

    partial_ref[...] = jnp.full((1, 8, 128), block_sum, dtype=jnp.float32)


# --------------------------------------------------------------------------------------
# Tiling / VMEM sizing
# --------------------------------------------------------------------------------------

def _vmem_capacity_bytes():
    try:
        return int(pltpu.get_tpu_info().vmem_capacity_bytes)
    except Exception:
        return 128 * 1024 * 1024   # conservative fallback (v5e/v6e size)


def _choose_tile_n(n, c, in_bytes_per_elem, budget):
    """Largest batch tile whose double-buffered inputs + f32/i32 temporaries fit `budget`,
    capped at ~N/2 (sublane-aligned) so the parallel grid has >=2 blocks for megacore."""
    # 2 pipeline buffers x (scores+targets) rows, plus ~8B/elem of in-kernel temporaries.
    bytes_per_row = 2 * c * in_bytes_per_elem + 8 * c
    cap = budget // max(bytes_per_row, 1)
    cap = int(max(16, min(cap, 1024)))             # amortize ~0.35us/step overhead
    cap -= cap % 16                                # sublane alignment (f32/bf16 packing)
    if n > 16:
        half = -(-((n + 1) // 2) // 16) * 16       # round_up(ceil(n/2), 16)
        cap = min(cap, max(16, half))              # guarantee >=2 grid blocks (v7x 2 TCs)
    return n if cap >= n else cap


def _vmem_limit_bytes(tn, c, in_bytes_per_elem, capacity):
    tile_bytes = tn * c * in_bytes_per_elem        # one buffer of all streamed inputs
    temps = tn * c * 8                             # f32 select result + i32 compare temps
    limit = 2 * tile_bytes + temps + (4 << 20)     # double-buffered + headroom
    return int(min(max(limit, 16 << 20), min(32 << 20, capacity // 2)))


# --------------------------------------------------------------------------------------
# Wrappers
# --------------------------------------------------------------------------------------

def _run(kernel, inputs, in_specs, n, tn, vmem_limit):
    num_blocks = pl.cdiv(n, tn)
    grid_spec = pltpu.PrefetchScalarGridSpec(
        num_scalar_prefetch=0,
        grid=(num_blocks,),
        in_specs=in_specs,
        out_specs=pl.BlockSpec((1, 8, 128), lambda i: (i, 0, 0)),
    )
    partials = pl.pallas_call(
        kernel,
        out_shape=jax.ShapeDtypeStruct((num_blocks, 8, 128), jnp.float32),
        grid_spec=grid_spec,
        compiler_params=pltpu.CompilerParams(
            dimension_semantics=("parallel",),     # independent blocks -> megacore on v7x
            vmem_limit_bytes=vmem_limit,
        ),
    )(*inputs)
    return partials


def nll_loss_pallas(scores, targets, *, tile_n=None):
    """Dense-targets path: scores, targets are (N, C) float arrays (native dtype).
    Returns scalar f32  (-mean_i scores[i, argmax(targets[i])]) * C."""
    assert scores.ndim == 2 and scores.shape == targets.shape
    n, c = scores.shape
    in_bytes = scores.dtype.itemsize + targets.dtype.itemsize

    capacity = _vmem_capacity_bytes()
    budget = min(16 << 20, capacity // 5)
    tn = _choose_tile_n(n, c, in_bytes, budget) if tile_n is None else int(tile_n)
    vmem_limit = _vmem_limit_bytes(tn, c, in_bytes, capacity)

    kernel = functools.partial(_nll_partial_dense_kernel,
                               n_total=n, tile_n=tn, num_classes=c)
    in_specs = [
        pl.BlockSpec((tn, c), lambda i: (i, 0)),
        pl.BlockSpec((tn, c), lambda i: (i, 0)),
    ]
    partials = _run(kernel, (scores, targets), in_specs, n, tn, vmem_limit)

    # nll_loss(reduction='mean') = -mean(picked); then scale by num classes.
    return (-jnp.sum(partials[:, 0, 0]) / jnp.float32(n)) * jnp.float32(c)


def nll_loss_pallas_from_labels(scores, labels, *, tile_n=None):
    """Integer-label fast path (half the HBM traffic of the dense path): scores (N, C),
    labels (N,) int. Equivalent to the dense path when targets are exact one-hot."""
    assert scores.ndim == 2
    n, c = scores.shape
    labels2d = labels.reshape(n, 1).astype(jnp.int32)
    in_bytes = scores.dtype.itemsize + 1          # labels row cost is negligible

    capacity = _vmem_capacity_bytes()
    budget = min(16 << 20, capacity // 5)
    tn = _choose_tile_n(n, c, in_bytes, budget) if tile_n is None else int(tile_n)
    vmem_limit = _vmem_limit_bytes(tn, c, in_bytes, capacity)

    kernel = functools.partial(_nll_partial_label_kernel,
                               n_total=n, tile_n=tn, num_classes=c)
    in_specs = [
        pl.BlockSpec((tn, c), lambda i: (i, 0)),
        pl.BlockSpec((tn, 1), lambda i: (i, 0)),
    ]
    partials = _run(kernel, (scores, labels2d), in_specs, n, tn, vmem_limit)
    return (-jnp.sum(partials[:, 0, 0]) / jnp.float32(n)) * jnp.float32(c)


def nll_loss_ref(scores, targets):
    s = scores.astype(jnp.float32)
    t = targets.astype(jnp.float32)
    idx = jnp.argmax(t, axis=1)
    picked = jnp.take_along_axis(s, idx[:, None], axis=1)[:, 0]
    return (-jnp.mean(picked)) * t.shape[1]


# --------------------------------------------------------------------------------------
# Self-test
# --------------------------------------------------------------------------------------

if __name__ == "__main__":
    key = jax.random.PRNGKey(0)
    k1, k2, k3, k4 = jax.random.split(key, 4)

    # Case 1: small aligned shapes (batch=8, classes=32), f32 log-probs + one-hot targets.
    N, C = 8, 32
    scores = jax.nn.log_softmax(jax.random.normal(k1, (N, C), dtype=jnp.float32), axis=1)
    labels = jax.random.randint(k2, (N,), 0, C)
    targets = jax.nn.one_hot(labels, C, dtype=jnp.float32)

    out = nll_loss_pallas(scores, targets)
    jax.block_until_ready(out)
    ref = nll_loss_ref(scores, targets)
    assert jnp.allclose(out, ref, rtol=1e-5, atol=1e-5), (out, ref)

    # Case 2: unaligned batch (20), bf16 scores (native dtype, no wrapper cast), forced
    # small tile so the partial last block exercises remainder masking + the 2-block grid.
    N2, C2 = 20, 48
    scores2 = jax.nn.log_softmax(
        jax.random.normal(k3, (N2, C2), dtype=jnp.float32), axis=1).astype(jnp.bfloat16)
    labels2 = jax.random.randint(k4, (N2,), 0, C2)
    targets2 = jax.nn.one_hot(labels2, C2, dtype=jnp.float32)

    out2 = nll_loss_pallas(scores2, targets2, tile_n=16)
    jax.block_until_ready(out2)
    ref2 = nll_loss_ref(scores2, targets2)
    assert jnp.allclose(out2, ref2, rtol=1e-4, atol=1e-4), (out2, ref2)

    # Case 3: integer-label fast path (half the HBM traffic) must match the dense path.
    out3 = nll_loss_pallas_from_labels(scores2, labels2, tile_n=16)
    jax.block_until_ready(out3)
    assert jnp.allclose(out3, ref2, rtol=1e-4, atol=1e-4), (out3, ref2)

    # Case 4: default (auto) tiling on the unaligned batch, auto-capped to >=2 blocks.
    out4 = nll_loss_pallas(scores2, targets2)
    jax.block_until_ready(out4)
    assert jnp.allclose(out4, ref2, rtol=1e-4, atol=1e-4), (out4, ref2)

    print("KERNEL_OK")
</pallas_src>

<mosaic_0001>
module attributes {stable_mosaic.version = 11 : i64} {
  func.func @_nll_partial_dense_kernel(%arg0: i32, %arg1: memref<8x32xf32, #tpu.memory_space<vmem>>, %arg2: memref<8x32xf32, #tpu.memory_space<vmem>>, %arg3: memref<1x8x128xf32, #tpu.memory_space<vmem>>) attributes {dimension_semantics = [#tpu.dimension_semantics<parallel>], iteration_bounds = array<i64: 1>, scalar_prefetch = 0 : i64, scratch_operands = 0 : i64, tpu.core_type = #tpu.core_type<tc>, window_params = [{transform_indices = @transform_0, window_bounds = array<i64: 8, 32>}, {transform_indices = @transform_1, window_bounds = array<i64: 8, 32>}, {transform_indices = @transform_2, window_bounds = array<i64: 1, 8, 128>}]} {
    %c0 = arith.constant 0 : index
    %c0_0 = arith.constant 0 : index
    %0 = vector.load %arg1[%c0, %c0_0] : memref<8x32xf32, #tpu.memory_space<vmem>>, vector<8x32xf32>
    %c0_1 = arith.constant 0 : index
    %c0_2 = arith.constant 0 : index
    %1 = vector.load %arg2[%c0_1, %c0_2] : memref<8x32xf32, #tpu.memory_space<vmem>>, vector<8x32xf32>
    %cst = arith.constant dense<0xFF800000> : vector<8xf32>
    %2 = vector.multi_reduction <maximumf>, %1, %cst [1] : vector<8x32xf32> to vector<8xf32>
    %3 = vector.shape_cast %2 : vector<8xf32> to vector<8x1xf32>
    %4 = tpu.iota {dimensions = array<i32: 1>} : vector<1x32xi32>
    %5 = vector.broadcast %3 : vector<8x1xf32> to vector<8x32xf32>
    %6 = arith.cmpf oeq, %1, %5 : vector<8x32xf32>
    %c32_i32 = arith.constant 32 : i32
    %7 = vector.shape_cast %4 : vector<1x32xi32> to vector<1x32xi32>
    %8 = vector.broadcast %7 : vector<1x32xi32> to vector<8x32xi32>
    %9 = vector.broadcast %c32_i32 : i32 to vector<8x32xi32>
    %10 = arith.select %6, %8, %9 : vector<8x32xi1>, vector<8x32xi32>
    %cst_3 = arith.constant dense<2147483647> : vector<8xi32>
    %11 = vector.multi_reduction <minsi>, %10, %cst_3 [1] : vector<8x32xi32> to vector<8xi32>
    %12 = vector.shape_cast %11 : vector<8xi32> to vector<8x1xi32>
    %13 = tpu.iota {dimensions = array<i32: 0>} : vector<8x1xi32>
    %c8_i32 = arith.constant 8 : i32
    %14 = arith.muli %arg0, %c8_i32 : i32
    %15 = vector.broadcast %14 : i32 to vector<8x1xi32>
    %16 = arith.addi %13, %15 : vector<8x1xi32>
    %17 = vector.broadcast %4 : vector<1x32xi32> to vector<8x32xi32>
    %18 = vector.broadcast %12 : vector<8x1xi32> to vector<8x32xi32>
    %19 = arith.cmpi eq, %17, %18 : vector<8x32xi32>
    %c8_i32_4 = arith.constant 8 : i32
    %20 = vector.broadcast %c8_i32_4 : i32 to vector<8x1xi32>
    %21 = arith.cmpi slt, %16, %20 : vector<8x1xi32>
    %22 = vector.broadcast %21 : vector<8x1xi1> to vector<8x32xi1>
    %23 = arith.andi %19, %22 : vector<8x32xi1>
    %cst_5 = arith.constant 0.000000e+00 : f32
    %24 = vector.broadcast %cst_5 : f32 to vector<8x32xf32>
    %25 = arith.select %23, %0, %24 : vector<8x32xi1>, vector<8x32xf32>
    %26 = vector.shape_cast %25 : vector<8x32xf32> to vector<1x8x32xf32>
    %cst_6 = arith.constant dense<0.000000e+00> : vector<1xf32>
    %27 = vector.multi_reduction <add>, %26, %cst_6 [1, 2] : vector<1x8x32xf32> to vector<1xf32>
    %28 = vector.shape_cast %27 : vector<1xf32> to vector<1x1x1xf32>
    %29 = vector.extract %28[0, 0, 0] : f32 from vector<1x1x1xf32>
    %30 = vector.broadcast %29 : f32 to vector<1x8x128xf32>
    %c0_7 = arith.constant 0 : index
    %c0_8 = arith.constant 0 : index
    %c0_9 = arith.constant 0 : index
    %31 = vector.load %arg3[%c0_7, %c0_8, %c0_9] : memref<1x8x128xf32, #tpu.memory_space<vmem>>, vector<1x8x128xf32>
    tpu.vector_store %arg3[%c0_7, %c0_8, %c0_9], %30 {strides = array<i32>} : memref<1x8x128xf32, #tpu.memory_space<vmem>>, vector<1x8x128xf32>,
    return
  }
  func.func @transform_0(%arg0: i32) -> (i32, i32) {
    %c0_i32 = arith.constant 0 : i32
    %c0_i32_0 = arith.constant 0 : i32
    return %arg0, %c0_i32 : i32, i32
  }
  func.func @transform_1(%arg0: i32) -> (i32, i32) {
    %c0_i32 = arith.constant 0 : i32
    %c0_i32_0 = arith.constant 0 : i32
    return %arg0, %c0_i32 : i32, i32
  }
  func.func @transform_2(%arg0: i32) -> (i32, i32, i32) {
    %c0_i32 = arith.constant 0 : i32
    %c0_i32_0 = arith.constant 0 : i32
    %c0_i32_1 = arith.constant 0 : i32
    return %arg0, %c0_i32, %c0_i32_0 : i32, i32, i32
  }
}

</mosaic_0001>

<bundles_post_ra>
// kernel: tpu_custom_call.1
= control target key start
LH: loop header
LB: loop body
LE: loop exit
PB: predicated region body
PF: predicated region fallthrough
CT: control target
= control target key end

     0   :  { %7 = vsyncpa [#allocation3], 0  ;;  %s234_s0 = inlined_call_operand.hbm [shape: f32[8,32], index: 0, kind: input, shape index: {}]   ;;  %s235_s1 = inlined_call_operand.hbm [shape: f32[8,32], index: 1, kind: input, shape index: {}]   ;;  %s236_s2 = inlined_call_operand.hbm [shape: f32[1,8,128], index: 2, kind: output, shape index: {}]  }
   0x1   :  { %8 = vsyncpa [#allocation6], 0 }
   0x2   :  { %9 = vsyncpa [#allocation4], 0  ;;  %s177_s9 = smov [#allocation2]   ;;  %s178_s11 = smov [#allocation5]  }
   0x3   :  { %s16_s10 = sshll.u32 %s177_s9, 4  ;;  %s26_s12 = sshll.u32 %s178_s11, 4  ;;  %s17_s10 = int_to_ptr.vmem [resolvable:$true] %s16_s10  ;;  %s27_s12 = int_to_ptr.vmem [resolvable:$true] %s26_s12 }
   0x4   :  { %s105_s15 = scalar_lea.hbm %s234_s0, 128 }
   0x5   :  { %p106_p0 = scmp.ne.s32.totalorder %s234_s0, %s105_s15  ;;  %p109_p1 = scmp.lt.u32.totalorder %s105_s15, %s234_s0 }
   0x7   :  { %p111_p2 = pnand %p109_p1, %p106_p0 }
   0x9   :  { %114 = shalt.err (!%p111_p2)
}
   0xa   :  { %s115_s20 = scalar_lea.vmem %s17_s10, 128  ;;  %p120_p4 = scmp.lt.s32.totalorder %s17_s10, %s17_s10 }
   0xb   :  { %p116_p3 = scmp.ne.s32.totalorder %s17_s10, %s115_s20  ;;  %p121_p5 = scmp.lt.s32.totalorder %s115_s20, %s115_s20 }
   0xd   :  { %p122_p6 = por %p121_p5, %p120_p4 }
   0xf   :  { %p123_p7 = pnand %p122_p6, %p116_p3 }
  0x11   :  { %126 = shalt.err (!%p123_p7)
}
  0x12   :  { %19 = dma.hbm_to_vmem [thread:$0]  %s234_s0, 128, %s17_s10, [#allocation3]  }
  0x13   :  { %s127_s25 = scalar_lea.hbm %s235_s1, 128 }
  0x14   :  { %p128_p8 = scmp.ne.s32.totalorder %s235_s1, %s127_s25  ;;  %p131_p9 = scmp.lt.u32.totalorder %s127_s25, %s235_s1 }
  0x16   :  { %p133_p10 = pnand %p131_p9, %p128_p8 }
  0x18   :  { %136 = shalt.err (!%p133_p10)
}
  0x19   :  { %s137_s30 = scalar_lea.vmem %s27_s12, 128  ;;  %p142_p12 = scmp.lt.s32.totalorder %s27_s12, %s27_s12 }
  0x1a   :  { %p138_p11 = scmp.ne.s32.totalorder %s27_s12, %s137_s30  ;;  %p143_p13 = scmp.lt.s32.totalorder %s137_s30, %s137_s30 }
  0x1c   :  { %p144_p0 = por %p143_p13, %p142_p12 }
  0x1e   :  { %p145_p1 = pnand %p144_p0, %p138_p11 }
  0x20   :  { %148 = shalt.err (!%p145_p1)
}
  0x21   :  { %29 = dma.hbm_to_vmem [thread:$0]  %s235_s1, 128, %s27_s12, [#allocation6]  }
  0x22   :  { %171 = dma.done.wait [#allocation3], 128  }
  0x23   :  { %172 = vsyncadd [#allocation3], 4294967168 }
  0x24   :  { %173 = dma.done.wait [#allocation6], 128  }
  0x25   :  { %174 = vsyncadd [#allocation6], 4294967168  ;;  %vm38_vm0 = vcmask 261120   ;;  %v37_v0 = vld [vmem:[#allocation5] sm:$0xff]  ;;  %v42_v2 = vlaneseq  ;;  %v36_v18 = vld [vmem:[#allocation2] sm:$0xff]  ;;  %s179_s1 = smov [#allocation7]  }
  0x26   :  { %v39_v1 = vsel %vm38_vm0, %v37_v0, -inf  ;;  %s90_s4 = sshll.u32 %s179_s1, 4  ;;  %s91_s4 = int_to_ptr.vmem [resolvable:$true] %s90_s4 }
  0x27   :  { %40 = vmax.xlane.f32.xlu0 %v39_v1  ;;  %v43_v3 = vand.u32 127, %v42_v2  ;;  %s149_s6 = scalar_lea.vmem %s91_s4, 128  ;;  %p154_p3 = scmp.lt.s32.totalorder %s91_s4, %s91_s4 }
  0x28   :  { %p150_p2 = scmp.ne.s32.totalorder %s91_s4, %s149_s6  ;;  %p155_p4 = scmp.lt.s32.totalorder %s149_s6, %s149_s6 }
  0x2a   :  { %p156_p5 = por %p155_p4, %p154_p3 }
  0x2c   :  { %p157_p6 = pnand %p156_p5, %p150_p2 }
  0xb4   :  { %v41_v4 = vpop.xlane.xlu0 %40 }
  0xb5   :  { %vm44_vm1 = vcmp.eq.f32.partialorder %v37_v0, %v41_v4 }
  0xb6   :  { %v45_v5 = vsel %vm44_vm1, %v43_v3, 32 }
  0xb7   :  { %v46_v6 = vsel %vm38_vm0, %v45_v5, 2147483647 }
  0xb8   :  { %v48_v7 = vshra.s32 %v46_v6, 16  ;;  %v47_v9 = vand.u32 65535, %v46_v6 }
  0xba   :  { %v50_v8 = vcvt.s32.f32 %v48_v7  ;;  %v49_v11 = vcvt.s32.f32 %v47_v9 }
  0xbc   :  { %51 = vmin.xlane.f32.xlu0 %v50_v8 }
 0x149   :  { %v52_v10 = vpop.xlane.xlu0 %51 }
 0x14a   :  { %vm53_vm2 = vcmp.eq.f32.partialorder %v50_v8, %v52_v10  ;;  %v58_v13 = vcvt.f32.s32 %v52_v10 }
 0x14b   :  { %v54_v12 = vsel %vm53_vm2, %v49_v11, inf }
 0x14c   :  { %55 = vmin.xlane.f32.xlu1 %v54_v12  ;;  %v59_v15 = vshll.u32 %v58_v13, 16 }
 0x1d9   :  { %v56_v14 = vpop.xlane.xlu1 %55 }
 0x1da   :  { %v57_v16 = vcvt.f32.s32 %v56_v14 }
 0x1dc   :  { %v60_v17 = vadd.s32 %v59_v15, %v57_v16 }
 0x1de   :  { %vm66_vm3 = vcmp.eq.s32.totalorder %v43_v3, %v60_v17 }
 0x1df   :  { %v71_v19 = vsel %vm66_vm3, %v36_v18, 0.0 }
 0x1e0   :  { %v72_v20 = vsel %vm38_vm0, %v71_v19, 0.0 }
 0x1e1   :  { %73 = vadd.xlane.f32.xlu1 %v72_v20 }
 0x26e   :  { %v74_v21 = vpop.xlane.xlu1 %73 }
 0x26f   :  { %v75_v22 = vrot.slane %v74_v21, 4 }
 0x271   :  { %v76_v23 = vadd.f32 %v75_v22, %v74_v21 }
 0x273   :  { %v77_v24 = vrot.slane %v76_v23, 2 }
 0x275   :  { %v78_v25 = vadd.f32 %v77_v24, %v76_v23 }
 0x277   :  { %v79_v26 = vrot.slane %v78_v25, 1 }
 0x279   :  { %v80_v27 = vadd.f32 %v79_v26, %v78_v25 }
 0x27b   :  { %100 = vpush %v80_v27 }
 0x2ac   :  { %s101_s5 = spop %100 }
 0x2ad   :  { %v82_v28 = vstv %s101_s5 }
 0x2ae   :  { %83 = vst [vmem:[#allocation7] sm:$0xff] %v82_v28 }
 0x2af   :  { %160 = shalt.err (!%p157_p6)
}
 0x2b0   :  { %s161_s9 = scalar_lea.hbm %s236_s2, 128 }
 0x2b1   :  { %p162_p7 = scmp.ne.s32.totalorder %s236_s2, %s161_s9  ;;  %p165_p8 = scmp.lt.u32.totalorder %s161_s9, %s236_s2 }
 0x2b3   :  { %p167_p9 = pnand %p165_p8, %p162_p7 }
 0x2b5   :  { %170 = shalt.err (!%p167_p9)
}
 0x2b6   :  { %93 = dma.vmem_to_hbm [thread:$0]  %s91_s4, 128, %s236_s2, [#allocation4]  }
 0x2b7   :  { %175 = dma.done.wait [#allocation4], 128  }
 0x2b8   :  { %176 = vsyncadd [#allocation4], 4294967168 }
 0x2b9   :  { %97 = vsyncpa [#allocation3], 1 }
 0x2ba   :  { %98 = vsyncpa [#allocation6], 1 }
 0x2bb   :  { %99 = vsyncpa [#allocation4], 1 }

</bundles_post_ra>
